<compile_context>
chip_gen: v6e
topology: v6e:2x2x1
jax: 0.10.0
libtpu: 0.0.40
codegen_flags: <defaults>
</compile_context>

<pallas_src>
import functools

import jax
import jax.numpy as jnp
from jax.experimental import pallas as pl
from jax.experimental.pallas import tpu as pltpu

INPUT_SIZE = 15
_HEAD_LANE = 128  # mu head padded to one full vreg lane width


def _round_up(n, m):
    return ((n + m - 1) // m) * m


def _slab_layout(in_sz, n_fc1, n_fc2, head_w):
    """Row offsets (8-aligned) of each packed parameter, and slab shape."""
    r_w1 = 0
    r_b1 = _round_up(in_sz, 8)
    r_w2 = r_b1 + 8
    r_b2 = r_w2 + _round_up(n_fc1, 8)
    r_wh = r_b2 + 8
    r_bh = r_wh + _round_up(n_fc2, 8)
    rows = r_bh + 8
    cols = max(_round_up(n_fc1, 128), _round_up(n_fc2, 128),
               _round_up(head_w, 128))
    return (r_w1, r_b1, r_w2, r_b2, r_wh, r_bh), rows, cols


def pack_params(params, *, deterministic):
    """Build the zero-padded f32 weight slab ONCE (call at init, not per step).

    Layout (lane dim padded to a multiple of 128):
      rows [r_w1 : r_w1+15]  w1            lanes [0:n_fc1]
      row   r_b1             b1            lanes [0:n_fc1]
      rows [r_w2 : ...]      w2            lanes [0:n_fc2]
      row   r_b2             b2            lanes [0:n_fc2]
      rows [r_wh : ...]      fused head W  mu lanes [0:128), log_std [128:256)
      row   r_bh             fused head b  same lane layout
    """
    w1, b1, w2, b2, wmu, bmu, wstd, bstd = params
    in_sz, n_fc1 = w1.shape
    n_fc2 = w2.shape[1]
    out_sz = wmu.shape[1]
    assert out_sz <= _HEAD_LANE

    head_w = _HEAD_LANE if deterministic else 2 * _HEAD_LANE
    offsets, rows, cols = _slab_layout(in_sz, n_fc1, n_fc2, head_w)
    r_w1, r_b1, r_w2, r_b2, r_wh, r_bh = offsets

    # Fused, lane-padded output head.
    wh = jnp.zeros((n_fc2, head_w), jnp.float32)
    bh = jnp.zeros((1, head_w), jnp.float32)
    wh = wh.at[:, 0:out_sz].set(jnp.asarray(wmu, jnp.float32))
    bh = bh.at[:, 0:out_sz].set(jnp.asarray(bmu, jnp.float32).reshape(1, -1))
    if not deterministic:
        wh = wh.at[:, _HEAD_LANE:_HEAD_LANE + out_sz].set(
            jnp.asarray(wstd, jnp.float32))
        bh = bh.at[:, _HEAD_LANE:_HEAD_LANE + out_sz].set(
            jnp.asarray(bstd, jnp.float32).reshape(1, -1))

    def place(slab, piece, row):
        piece = jnp.asarray(piece, jnp.float32)
        if piece.ndim == 1:
            piece = piece.reshape(1, -1)
        pr, pc = piece.shape
        return slab.at[row:row + pr, 0:pc].set(piece)

    slab = jnp.zeros((rows, cols), jnp.float32)
    slab = place(slab, w1, r_w1)
    slab = place(slab, b1, r_b1)
    slab = place(slab, w2, r_w2)
    slab = place(slab, b2, r_b2)
    slab = place(slab, wh, r_wh)
    slab = place(slab, bh, r_bh)
    return slab


def _make_net_kernel(in_sz, n_fc1, n_fc2, out_sz, deterministic, pid, offsets):
    r_w1, r_b1, r_w2, r_b2, r_wh, r_bh = offsets

    def kernel(in_ref, p_ref, out_ref):
        xin = in_ref[...]                      # (B, in_sz[+out_sz]) f32
        x = xin[:, 0:in_sz]

        # hidden1 + ReLU
        w1 = p_ref[r_w1:r_w1 + in_sz, 0:n_fc1]
        b1 = p_ref[r_b1:r_b1 + 1, 0:n_fc1]
        h1 = jnp.maximum(
            jnp.dot(x, w1, preferred_element_type=jnp.float32) + b1, 0.0)

        # hidden2 + ReLU
        w2 = p_ref[r_w2:r_w2 + n_fc1, 0:n_fc2]
        b2 = p_ref[r_b2:r_b2 + 1, 0:n_fc2]
        h2 = jnp.maximum(
            jnp.dot(h1, w2, preferred_element_type=jnp.float32) + b2, 0.0)

        # fused output head: mu in lanes [0:128), log_std in lanes [128:256)
        wh = p_ref[r_wh:r_wh + n_fc2, :]
        bh = p_ref[r_bh:r_bh + 1, :]
        head = jnp.dot(h2, wh, preferred_element_type=jnp.float32) + bh

        mu = head[:, 0:out_sz]
        if deterministic:
            out_ref[...] = jnp.tanh(mu) if pid else jnp.clip(mu, -1.0, 1.0)
            # TODO(synk): PyTorch additionally calls .detach().numpy(); host
            # transfer has no in-kernel equivalent and is left to the caller.
        else:
            log_std = head[:, _HEAD_LANE:_HEAD_LANE + out_sz]
            eps = xin[:, in_sz:in_sz + out_sz]
            std = jnp.exp(log_std) + 1e-6
            out_ref[...] = jnp.clip(mu + std * eps, -1.0, 1.0)

    return kernel


@functools.partial(jax.jit, static_argnames=("dims", "deterministic", "pid"))
def net_forward(x, slab, noise=None, *, dims, deterministic=False, pid=False):
    """Whole forward pass in one gridless Pallas kernel (2 input DMAs: the
    activation buffer and the pre-packed weight slab; all blocks = full
    arrays, VMEM-resident)."""
    in_sz, n_fc1, n_fc2, out_sz = dims
    batch = x.shape[0]

    x = x.astype(jnp.float32)
    if deterministic:
        xin = x
    else:
        if noise is None:
            raise ValueError("stochastic forward requires a `noise` array of "
                             "shape (batch, output_sz)")
        # Fold eps into the x buffer at lanes [in_sz : in_sz+out_sz].
        xin = jnp.concatenate([x, noise.astype(jnp.float32)], axis=1)

    head_w = _HEAD_LANE if deterministic else 2 * _HEAD_LANE
    offsets, rows, cols = _slab_layout(in_sz, n_fc1, n_fc2, head_w)
    assert slab.shape == (rows, cols), (
        "slab was packed for a different mode/shape; use pack_params(..., "
        f"deterministic={deterministic})")

    kernel = _make_net_kernel(in_sz, n_fc1, n_fc2, out_sz,
                              deterministic, pid, offsets)

    eff_head = out_sz if deterministic else 2 * out_sz
    flops = 2 * batch * (in_sz * n_fc1 + n_fc1 * n_fc2 + n_fc2 * eff_head)
    transcendentals = 0 if (deterministic and not pid) else batch * out_sz
    bytes_accessed = 4 * (xin.size + slab.size + batch * out_sz)

    return pl.pallas_call(
        kernel,
        out_shape=jax.ShapeDtypeStruct((batch, out_sz), jnp.float32),
        in_specs=[pl.BlockSpec(memory_space=pltpu.MemorySpace.VMEM),
                  pl.BlockSpec(memory_space=pltpu.MemorySpace.VMEM)],
        out_specs=pl.BlockSpec(memory_space=pltpu.MemorySpace.VMEM),
        compiler_params=pltpu.CompilerParams(vmem_limit_bytes=2 * 1024 * 1024),
        cost_estimate=pl.CostEstimate(flops=flops,
                                      transcendentals=transcendentals,
                                      bytes_accessed=bytes_accessed),
    )(xin, slab)


def init_params(key, n_fc1, n_fc2, output_sz):
    """Deterministic PyTorch-style (Kaiming-uniform-ish) init."""
    def linear(key, fan_in, fan_out):
        kw, kb = jax.random.split(key)
        bound = 1.0 / jnp.sqrt(float(fan_in))
        w = jax.random.uniform(kw, (fan_in, fan_out), jnp.float32, -bound, bound)
        b = jax.random.uniform(kb, (1, fan_out), jnp.float32, -bound, bound)
        return w, b

    k1, k2, k3, k4 = jax.random.split(key, 4)
    w1, b1 = linear(k1, INPUT_SIZE, n_fc1)
    w2, b2 = linear(k2, n_fc1, n_fc2)
    wmu, bmu = linear(k3, n_fc2, output_sz)
    wstd, bstd = linear(k4, n_fc2, output_sz)
    return (w1, b1, w2, b2, wmu, bmu, wstd, bstd)


def net_reference(x, params, noise, deterministic, pid):
    """Pure-JAX reference of the PyTorch forward (reparameterized sample)."""
    w1, b1, w2, b2, wmu, bmu, wstd, bstd = params
    x = x.astype(jnp.float32)
    h1 = jnp.maximum(x @ w1 + b1, 0.0)
    h2 = jnp.maximum(h1 @ w2 + b2, 0.0)
    mu = h2 @ wmu + bmu
    if deterministic:
        return jnp.tanh(mu) if pid else jnp.clip(mu, -1.0, 1.0)
    log_std = h2 @ wstd + bstd
    std = jnp.exp(log_std) + 1e-6
    return jnp.clip(mu + std * noise, -1.0, 1.0)


if __name__ == "__main__":
    key = jax.random.PRNGKey(0)
    k_params, k_x, k_noise = jax.random.split(key, 3)

    batch = 8
    n_fc1 = 32
    n_fc2 = 32
    output_sz = 4
    dims = (INPUT_SIZE, n_fc1, n_fc2, output_sz)

    params = init_params(k_params, n_fc1, n_fc2, output_sz)
    x = jax.random.normal(k_x, (batch, INPUT_SIZE), jnp.float32)
    # Standard-normal noise for the reparameterized Normal(mu, std) sample.
    noise = jax.random.normal(k_noise, (batch, output_sz), jnp.float32)

    # Pack the weight slabs ONCE (init-time), not per forward call.
    slab_sto = pack_params(params, deterministic=False)
    slab_det = pack_params(params, deterministic=True)
    jax.block_until_ready((slab_sto, slab_det))

    # Stochastic path: clamp(mu + std*eps, -1, 1)
    out = net_forward(x, slab_sto, noise, dims=dims,
                      deterministic=False, pid=False)
    jax.block_until_ready(out)

    # Deterministic paths: clamp(mu, -1, 1) and tanh(mu)
    out_det = net_forward(x, slab_det, dims=dims, deterministic=True, pid=False)
    out_pid = net_forward(x, slab_det, dims=dims, deterministic=True, pid=True)
    jax.block_until_ready((out_det, out_pid))

    assert out.shape == (batch, output_sz)
    assert out_det.shape == (batch, output_sz)
    assert out_pid.shape == (batch, output_sz)

    # Correctness vs pure-JAX reference.
    ref = net_reference(x, params, noise, False, False)
    ref_det = net_reference(x, params, noise, True, False)
    ref_pid = net_reference(x, params, noise, True, True)
    assert float(jnp.max(jnp.abs(out - ref))) < 1e-3
    assert float(jnp.max(jnp.abs(out_det - ref_det))) < 1e-3
    assert float(jnp.max(jnp.abs(out_pid - ref_pid))) < 1e-3

    print("KERNEL_OK")
</pallas_src>

<mosaic_0001>
module attributes {stable_mosaic.version = 11 : i64} {
  func.func @kernel(%arg0: memref<8x19xf32, #tpu.memory_space<vmem>>, %arg1: memref<104x256xf32, #tpu.memory_space<vmem>>, %arg2: memref<8x4xf32, #tpu.memory_space<vmem>>) attributes {dimension_semantics = [], scalar_prefetch = 0 : i64, scratch_operands = 0 : i64, tpu.core_type = #tpu.core_type<tc>} {
    %c0 = arith.constant 0 : index
    %c0_0 = arith.constant 0 : index
    %0 = vector.load %arg0[%c0, %c0_0] : memref<8x19xf32, #tpu.memory_space<vmem>>, vector<8x19xf32>
    %1 = vector.extract_strided_slice %0 {offsets = [0, 0], sizes = [8, 15], strides = [1, 1]} : vector<8x19xf32> to vector<8x15xf32>
    %c0_1 = arith.constant 0 : index
    %c0_2 = arith.constant 0 : index
    %2 = vector.load %arg1[%c0_1, %c0_2] : memref<104x256xf32, #tpu.memory_space<vmem>>, vector<15x32xf32>
    %c16 = arith.constant 16 : index
    %c0_3 = arith.constant 0 : index
    %3 = vector.load %arg1[%c16, %c0_3] : memref<104x256xf32, #tpu.memory_space<vmem>>, vector<1x32xf32>
    %cst = arith.constant dense<0.000000e+00> : vector<8x32xf32>
    %4 = tpu.matmul %1, %2, %cst {dimension_numbers = #tpu.dot_dimension_numbers<[1], [0], [0], [1], [0, 0, 1, 1], [], []>} : vector<8x15xf32>, vector<15x32xf32>, vector<8x32xf32> -> vector<8x32xf32>
    %5 = vector.broadcast %3 : vector<1x32xf32> to vector<8x32xf32>
    %6 = arith.addf %4, %5 : vector<8x32xf32>
    %cst_4 = arith.constant 0.000000e+00 : f32
    %7 = vector.broadcast %cst_4 : f32 to vector<8x32xf32>
    %8 = arith.maximumf %6, %7 : vector<8x32xf32>
    %c24 = arith.constant 24 : index
    %c0_5 = arith.constant 0 : index
    %9 = vector.load %arg1[%c24, %c0_5] : memref<104x256xf32, #tpu.memory_space<vmem>>, vector<32x32xf32>
    %c56 = arith.constant 56 : index
    %c0_6 = arith.constant 0 : index
    %10 = vector.load %arg1[%c56, %c0_6] : memref<104x256xf32, #tpu.memory_space<vmem>>, vector<1x32xf32>
    %cst_7 = arith.constant dense<0.000000e+00> : vector<8x32xf32>
    %11 = tpu.matmul %8, %9, %cst_7 {dimension_numbers = #tpu.dot_dimension_numbers<[1], [0], [0], [1], [0, 0, 1, 1], [], []>} : vector<8x32xf32>, vector<32x32xf32>, vector<8x32xf32> -> vector<8x32xf32>
    %12 = vector.broadcast %10 : vector<1x32xf32> to vector<8x32xf32>
    %13 = arith.addf %11, %12 : vector<8x32xf32>
    %cst_8 = arith.constant 0.000000e+00 : f32
    %14 = vector.broadcast %cst_8 : f32 to vector<8x32xf32>
    %15 = arith.maximumf %13, %14 : vector<8x32xf32>
    %c64 = arith.constant 64 : index
    %c0_9 = arith.constant 0 : index
    %16 = vector.load %arg1[%c64, %c0_9] : memref<104x256xf32, #tpu.memory_space<vmem>>, vector<32x256xf32>
    %c96 = arith.constant 96 : index
    %c0_10 = arith.constant 0 : index
    %17 = vector.load %arg1[%c96, %c0_10] : memref<104x256xf32, #tpu.memory_space<vmem>>, vector<1x256xf32>
    %cst_11 = arith.constant dense<0.000000e+00> : vector<8x256xf32>
    %18 = tpu.matmul %15, %16, %cst_11 {dimension_numbers = #tpu.dot_dimension_numbers<[1], [0], [0], [1], [0, 0, 1, 1], [], []>} : vector<8x32xf32>, vector<32x256xf32>, vector<8x256xf32> -> vector<8x256xf32>
    %19 = vector.broadcast %17 : vector<1x256xf32> to vector<8x256xf32>
    %20 = arith.addf %18, %19 : vector<8x256xf32>
    %21 = vector.extract_strided_slice %20 {offsets = [0, 0], sizes = [8, 4], strides = [1, 1]} : vector<8x256xf32> to vector<8x4xf32>
    %22 = vector.extract_strided_slice %20 {offsets = [0, 128], sizes = [8, 4], strides = [1, 1]} : vector<8x256xf32> to vector<8x4xf32>
    %23 = vector.extract_strided_slice %0 {offsets = [0, 15], sizes = [8, 4], strides = [1, 1]} : vector<8x19xf32> to vector<8x4xf32>
    %24 = math.exp %22 : vector<8x4xf32>
    %cst_12 = arith.constant 9.99999997E-7 : f32
    %25 = vector.broadcast %cst_12 : f32 to vector<8x4xf32>
    %26 = arith.addf %24, %25 : vector<8x4xf32>
    %27 = arith.mulf %26, %23 : vector<8x4xf32>
    %28 = arith.addf %21, %27 : vector<8x4xf32>
    %cst_13 = arith.constant -1.000000e+00 : f32
    %cst_14 = arith.constant 1.000000e+00 : f32
    %29 = vector.broadcast %cst_13 : f32 to vector<8x4xf32>
    %30 = arith.maximumf %29, %28 : vector<8x4xf32>
    %31 = vector.broadcast %cst_14 : f32 to vector<8x4xf32>
    %32 = arith.minimumf %31, %30 : vector<8x4xf32>
    %c0_15 = arith.constant 0 : index
    %c0_16 = arith.constant 0 : index
    %33 = vector.load %arg2[%c0_15, %c0_16] : memref<8x4xf32, #tpu.memory_space<vmem>>, vector<8x4xf32>
    tpu.vector_store %arg2[%c0_15, %c0_16], %32 {strides = array<i32>} : memref<8x4xf32, #tpu.memory_space<vmem>>, vector<8x4xf32>,
    return
  }
}

</mosaic_0001>

<bundles_post_ra>
// kernel: net_forward.1
= control target key start
LH: loop header
LB: loop body
LE: loop exit
PB: predicated region body
PF: predicated region fallthrough
CT: control target
= control target key end

     0   :  { %7 = vsyncpa [#allocation3], 0  ;;  %s361_s9 = smov [#allocation2]   ;;  %s393_s0 = inlined_call_operand.vmem [shape: f32[8,19], index: 0, kind: input, shape index: {}]   ;;  %s394_s1 = inlined_call_operand.hbm [shape: f32[104,256], index: 1, kind: input, shape index: {}]   ;;  %s395_s2 = inlined_call_operand.vmem [shape: f32[8,4], index: 2, kind: output, shape index: {}]  }
   0x1   :  { %s15_s10 = sshll.u32 %s361_s9, 4  ;;  %s16_s10 = int_to_ptr.vmem [resolvable:$true] %s15_s10 }
   0x2   :  { %s347_s11 = scalar_lea.vmem %s16_s10, 3328  ;;  %p352_p1 = scmp.lt.s32.totalorder %s16_s10, %s16_s10 }
   0x3   :  { %p348_p0 = scmp.ne.s32.totalorder %s16_s10, %s347_s11  ;;  %p353_p2 = scmp.lt.s32.totalorder %s347_s11, %s347_s11 }
   0x5   :  { %p354_p3 = por %p353_p2, %p352_p1 }
   0x7   :  { %p355_p4 = pnand %p354_p3, %p348_p0 }
   0x9   :  { %358 = shalt.err (!%p355_p4)
}
   0xa   :  { %s362_s12 = smov 256   ;;  %s363_s13 = smov 16  }
   0xb   :  { %21 = dma.hbm_to_vmem [thread:$0]  %s394_s1, 3328, %s16_s10, [#allocation3], %s362_s12, %s362_s12, %s363_s13  }
   0xc   :  { %359 = dma.done.wait [#allocation3], 3328  }
   0xd   :  { %360 = vsyncadd [#allocation3], 4294963968  ;;  %v364_v0 = vmov 0.0   ;;  %vm365_vm0 = vmmov 0   ;;  %vm33_vm1 = vcmask 1046528   ;;  %v26_v2 = vld [vmem:[#allocation2] sm:$0xff]  ;;  %v199_v26 = vlaneseq }
   0xe   :  { %313 = vmatprep.subr.mxu0 %v364_v0  ;;  %317 = vmatprep.mubr.msk.f32.mxu0 %vm365_vm0, %v364_v0  ;;  %v27_v1 = vld [vmem:[#allocation2 + $0x10] sm:$0x7f]  ;;  %v25_v3 = vld [vmem:[%s393_s0] sm:$0xff]  ;;  %vm29_vm2 = vcmask 121856   ;;  %v195_v8 = vld [vmem:[#allocation2 + $0xb8] sm:$0xff]  ;;  %vm113_vm3 = vcmask 261120  }
   0xf   :  { %320 = vmatprep.subr.mxu1 %v364_v0  ;;  %328 = vmatprep.mubr.msk.f32.mxu1 %vm365_vm0, %v364_v0  ;;  %v111_v4 = vld [vmem:[#allocation2 + $0x60] sm:$0xff]  ;;  %v110_v5 = vld [vmem:[#allocation2 + $0x50] sm:$0xff]  ;;  %v193_v10 = vld [vmem:[#allocation2 + $0xa8] sm:$0xff]  ;;  %s366_s0 = smov 113   ;;  %v200_v27 = vshrl.u32 %v199_v26, 7  ;;  %vm293_vm4 = vcmask 31744  }
  0x10   :  { %314 = vmatpush3.msk.msra.mxu0 %vm33_vm1, %v27_v1  ;;  %321 = vmatpush3.msra.mxu1 %v111_v4  ;;  %v109_v6 = vld [vmem:[#allocation2 + $0x40] sm:$0xff]  ;;  %v108_v7 = vld [vmem:[#allocation2 + $0x30] sm:$0xff]  ;;  %v191_v17 = vld [vmem:[#allocation2 + $0x98] sm:$0xff] }
  0x11   :  { %315 = vmatprep.subr.mxu0 %v364_v0  ;;  %322 = vmatprep.subr.mxu1 %v364_v0  ;;  %v194_v9 = vld [vmem:[#allocation2 + $0xb0] sm:$0xff]  ;;  %v28_v11 = vld [vmem:[#allocation2 + $0x20] ss:$0 sm:$0xff]  ;;  %v189_v19 = vld [vmem:[#allocation2 + $0x88] sm:$0xff]  ;;  %v205_v28 = vsub.s32 1, %v200_v27  ;;  %v201_v35 = vsub.s32 0, %v200_v27 }
  0x12   :  { %316 = vmatpush3.msra.mxu0 %v26_v2  ;;  %323 = vmatpush3.msra.mxu1 %v110_v5  ;;  %v192_v16 = vld [vmem:[#allocation2 + $0xa0] sm:$0xff]  ;;  %v190_v18 = vld [vmem:[#allocation2 + $0x90] sm:$0xff] }
  0x13   :  { %318 = vmatmul.mubr.msk.f32.vlgmr.msra.gmra.mxu0 %vm29_vm2, %v25_v3  ;;  %324 = vmatprep.subr.mxu1 %v364_v0  ;;  %v188_v20 = vld [vmem:[#allocation2 + $0x80] sm:$0xff]  ;;  %v112_v21 = vld [vmem:[#allocation2 + $0x70] ss:$0 sm:$0xff] }
  0x14   :  { %276 = vmatprep.mubr.f32.mxu0 %v364_v0  ;;  %325 = vmatpush3.msra.mxu1 %v109_v6  ;;  %v197_v29 = vld [vmem:[#allocation2 + $0xc0] ss:$8 sm:$0x3] }
  0x15   :  { %326 = vmatprep.subr.mxu1 %v364_v0  ;;  %236 = vmatprep.subr.mxu0 %v195_v8  ;;  %v206_v30 = vrot.slane %v197_v29, %v205_v28  ;;  %v202_v36 = vrot.slane %v197_v29, %v201_v35 }
  0x16   :  { %327 = vmatpush3.msra.mxu1 %v108_v7  ;;  %237 = vmatpush1.msra.mxu0 %v194_v9 }
  0x17   :  { %238 = vmatprep.subr.mxu0 %v193_v10  ;;  %286 = vrot.lane.b32.xlu0 %v25_v3, %s366_s0 }
  0x18   :  { %239 = vmatpush1.msra.mxu0 %v192_v16 }
  0x19   :  { %240 = vmatprep.subr.mxu0 %v191_v17 }
  0x1a   :  { %241 = vmatpush1.msra.mxu0 %v190_v18 }
  0x1b   :  { %242 = vmatprep.subr.mxu0 %v189_v19 }
  0x1c   :  { %243 = vmatpush1.msra.mxu0 %v188_v20 }
  0x89   :  { %v287_v38 = vpop.permute.xlu0 %286 }
  0xd3   :  { %v103_v12 = vpop.f32.mrf.mxu0 }
  0xd4   :  { %v104_v13 = vadd.f32 %v103_v12, %v28_v11 }
  0xd5   :  { %v319_v14 = vpop.f32.mrf.mxu0 }
  0xd6   :  { %v107_v15 = vmax.f32 %v104_v13, 0.0 }
  0xd8   :  { %329 = vmatmul.mubr.msk.f32.vlgmr.msra.gmra.mxu1 %vm113_vm3, %v107_v15 }
 0x198   :  { %v183_v22 = vpop.f32.mrf.mxu1 }
 0x199   :  { %v184_v23 = vadd.f32 %v183_v22, %v112_v21 }
 0x19a   :  { %v330_v24 = vpop.f32.mrf.mxu1 }
 0x19b   :  { %v187_v25 = vmax.f32 %v184_v23, 0.0 }
 0x19d   :  { %303 = vmatmul.mubr.msk.f32.vlgmr.msra.gmra.mxu0 %vm113_vm3, %v187_v25 }
 0x25d   :  { %v278_v31 = vpop.f32.mrf.mxu0 }
 0x25e   :  { %v279_v40 = vadd.f32 %v278_v31, %v202_v36 }
 0x25f   :  { %v280_v32 = vpop.f32.mrf.mxu0 }
 0x260   :  { %v281_v33 = vadd.f32 %v280_v32, %v206_v30 }
 0x262   :  { %v283_v34 = vmul.f32 1.442695, %v281_v33 }
 0x264   :  { %337 = vpow2.f32 %v283_v34 }
 0x271   :  { %v338_v37 = vpop.eup %337 }
 0x272   :  { %v285_v39 = vadd.f32 1e-06, %v338_v37 }
 0x274   :  { %v289_v41 = vmul.f32 %v287_v38, %v285_v39 }
 0x276   :  { %v290_v42 = vadd.f32 %v289_v41, %v279_v40 }
 0x278   :  { %v304_v43 = vclamps-f32 %v290_v42, 1.0 }
 0x27a   :  { %294 = vst.msk [vmem:[%s395_s2] sm:$0xff] %vm293_vm4, %v304_v43 }
 0x27b   :  { %299 = vsyncpa [#allocation3], 1 }

</bundles_post_ra>
